<compile_context>
chip_gen: v7x
topology: tpu7x:2x2x1
jax: 0.10.0
libtpu: 0.0.40
codegen_flags: <defaults>
</compile_context>

<pallas_src>
import jax
import jax.numpy as jnp
from jax import lax
from jax.experimental import pallas as pl
from jax.experimental.pallas import tpu as pltpu

LANE = 128                                # lane width (minor axis)
_TARGET_STEP_BYTES = 6 * 1024 * 1024      # x-block + w-block bytes per grid step
_VMEM_LIMIT_BYTES = 48 * 1024 * 1024      # headroom under v7x's 64 MiB physical VMEM
_CHUNK_GROUPS = 8                         # groups reduced per inner-loop iteration


def _largest_divisor_leq(n: int, cap: int) -> int:
    """Largest divisor of n that is <= cap (so blocks tile n exactly, no padding)."""
    cap = max(1, min(n, cap))
    for d in range(cap, 0, -1):
        if n % d == 0:
            return d
    return 1


def _make_fom_kernel(chunk: int, n_full: int, rem: int):
    """Weighted-square streaming reduce over one feature chunk.

    w_ref: VMEM (1, g_block, S, 128) f32        weight chunk (fetched once)
    x_ref: VMEM (B, g_block, S, 128) f32/bf16   design chunk (all batch rows)
    o_ref: VMEM (1, B, S, 128) f32              resident accumulator block
    """

    def kernel(w_ref, x_ref, o_ref):
        r = pl.program_id(1)

        @pl.when(r == 0)
        def _():
            o_ref[...] = jnp.zeros_like(o_ref)

        def partial(off, size):
            # (B, size, S, 128) * (1, size, S, 128): pure VPU mul/adds; the sum
            # over the group axis is vreg-wise, no cross-lane (XLU) reduce and
            # no narrow stores in the hot loop.  bf16 upcast happens per chunk.
            x = x_ref[:, pl.ds(off, size)].astype(jnp.float32)
            w = w_ref[:, pl.ds(off, size)].astype(jnp.float32)
            return jnp.sum(w * x * x, axis=1)          # (B, S, 128)

        def body(i, acc):
            off = pl.multiple_of(i * chunk, chunk)
            return acc + partial(off, chunk)

        acc = jnp.zeros(o_ref.shape[1:], jnp.float32)
        acc = lax.fori_loop(0, n_full, body, acc, unroll=min(8, n_full))
        if rem:                                        # static ragged chunk tail
            acc = acc + partial(n_full * chunk, rem)
        o_ref[...] += acc[None]

    return kernel


def _fom_main_pallas(w4, x4):
    """out[b] = sum_g sum(w4[0, g] * x4[b, g]**2).  Returns (B,) f32.

    w4: (1, n_groups, S, 128) f32
    x4: (B, n_groups, S, 128) f32 or bf16
    """
    B, n_groups, S, L = x4.shape
    itemsize = jnp.dtype(x4.dtype).itemsize
    bytes_per_group = S * L * (B * itemsize + 4)       # B design rows + f32 weight
    g_target = max(1, _TARGET_STEP_BYTES // bytes_per_group)
    # Largest block that divides n_groups exactly: no padded x, no partial
    # blocks, no masking.  (A large prime n_groups degrades to small blocks but
    # stays correct.)
    g_block = _largest_divisor_leq(n_groups, g_target)
    n_chunks = n_groups // g_block

    # Split the feature (reduction) axis across v7x's two TensorCores when the
    # batch alone cannot keep both busy; the partials are summed outside.
    n_split = 2 if (n_chunks % 2 == 0 and n_chunks >= 2) else 1
    r_per_split = n_chunks // n_split

    chunk = min(_CHUNK_GROUPS, g_block)
    n_full, rem = divmod(g_block, chunk)
    kernel = _make_fom_kernel(chunk, n_full, rem)

    partials = pl.pallas_call(
        kernel,
        out_shape=jax.ShapeDtypeStruct((n_split, B, S, L), jnp.float32),
        grid_spec=pltpu.PrefetchScalarGridSpec(
            num_scalar_prefetch=0,
            grid=(n_split, r_per_split),
            in_specs=[
                # Weight: one chunk per (split, r) grid point -> fetched exactly
                # once from HBM (no per-batch re-streaming).
                pl.BlockSpec((1, g_block, S, L),
                             lambda c, r: (0, c * r_per_split + r, 0, 0)),
                # Design: the full batch is folded into the block.
                pl.BlockSpec((B, g_block, S, L),
                             lambda c, r: (0, c * r_per_split + r, 0, 0)),
            ],
            # Lane-dense f32 output block, resident across the reduction axis.
            out_specs=pl.BlockSpec((1, B, S, L), lambda c, r: (c, 0, 0, 0)),
        ),
        compiler_params=pltpu.CompilerParams(
            dimension_semantics=("parallel", "arbitrary"),
            vmem_limit_bytes=_VMEM_LIMIT_BYTES,
        ),
    )(w4, x4)

    # Tiny final cross-lane/sublane reduction (n_split * B * S * 128 elems) in XLA.
    return partials.sum(axis=(0, 2, 3))


def make_cal_obj_and_grad_fn(weight_field):
    """Build a synthetic 'simulation' callback whose forward objective is the
    Pallas kernel above.  All weight-side reshaping/splitting is done ONCE here,
    not per call."""
    w_flat = jnp.asarray(weight_field, jnp.float32).reshape(-1)
    F = int(w_flat.shape[0])

    # Pre-build the weight layout for both supported sublane packings:
    #   f32 designs -> (8, 128) groups, bf16 designs -> (16, 128) groups.
    prepared = {}
    for sub in (8, 16):
        group = sub * LANE
        n_groups = F // group
        f_main = n_groups * group
        w_main = (w_flat[:f_main].reshape(1, n_groups, sub, LANE)
                  if n_groups else None)
        w_tail = w_flat[f_main:]
        prepared[sub] = (f_main, n_groups, w_main, w_tail)

    def cal_obj_and_grad_fn(adjoint_mode, resolution, eps_multiplier, obj_mode, design):
        # obj_mode / adjoint_mode only select solver behaviour in the real code;
        # the forward objective math is unchanged here.
        B = design.shape[0]
        x_flat = design.reshape(B, -1)
        feat = x_flat.shape[1]
        sub = 16 if x_flat.dtype == jnp.bfloat16 else 8
        f_main, n_groups, w_main, w_tail = prepared[sub]

        per_design = jnp.zeros((B,), jnp.float32)
        if n_groups > 0:
            x_main = x_flat if f_main == feat else lax.slice_in_dim(x_flat, 0, f_main, axis=1)
            x4 = x_main.reshape(B, n_groups, sub, LANE)
            per_design = per_design + _fom_main_pallas(w_main, x4)
        if f_main < feat:
            # Ragged tail (< one group): negligible work done in XLA instead of
            # materializing a padded copy of the whole design field.
            x_tail = x_flat[:, f_main:].astype(jnp.float32)
            per_design = per_design + (w_tail[None, :] * x_tail * x_tail).sum(axis=1)

        cell_area = 1.0 / float(resolution) ** 2        # grid-cell scaling (glue)
        # eps_multiplier folded out of the kernel: sum w*(m*x)^2 == m^2 * sum w*x^2
        scale = cell_area * float(eps_multiplier) ** 2
        return per_design.sum() * scale                 # scalar FoM

    return cal_obj_and_grad_fn


class SimulatedFoM:
    """JAX mirror of the PyTorch SimulatedFoM module (forward pass only)."""

    def __init__(self, cal_obj_and_grad_fn, adjoint_mode: str = "fdtd"):
        self.cal_obj_and_grad_fn = cal_obj_and_grad_fn
        self.adjoint_mode = adjoint_mode

    def __call__(self, resolution, *args, **kwargs):
        obj_mode = kwargs.get("mode", "light_forward")
        eps_multiplier = kwargs.get("eps_multiplier", 1.0)
        # TODO(synk): AdjointGradient's custom backward (adjoint-method gradient
        # produced by an external FDTD solver) has no Pallas equivalent; only
        # the forward FoM evaluation is implemented.
        fom = self.cal_obj_and_grad_fn(
            self.adjoint_mode, resolution, eps_multiplier, obj_mode, *args
        )
        return fom

    def extra_repr(self) -> str:
        return f"adjoint_mode={self.adjoint_mode}"


if __name__ == "__main__":
    key = jax.random.PRNGKey(0)
    k_x, k_w = jax.random.split(key)

    B, C, H, W = 2, 4, 16, 16  # design batch, channels, spatial (F = 1024)
    # Synthetic permittivity design field (NCHW), e.g. eps in [1, 12].
    x = jax.random.uniform(k_x, (B, C, H, W), jnp.float32, minval=1.0, maxval=12.0)
    # Deterministic synthetic FoM weight field (stand-in for the simulation's
    # measurement / monitor weighting).
    weight_field = jax.random.uniform(k_w, (C, H, W), jnp.float32)

    fom_layer = SimulatedFoM(make_cal_obj_and_grad_fn(weight_field), adjoint_mode="fdtd")

    resolution = 50
    eps_multiplier = 1.2
    fom = fom_layer(resolution, x, mode="light_forward", eps_multiplier=eps_multiplier)
    fom = jax.block_until_ready(fom)

    # Silent correctness check against a pure-JAX reference.
    ref = (
        (weight_field.reshape(1, -1) * (eps_multiplier * x.reshape(B, -1)) ** 2).sum()
        / (resolution ** 2)
    )
    assert jnp.allclose(fom, ref, rtol=1e-5, atol=1e-5), (fom, ref)

    print("KERNEL_OK")
</pallas_src>

<mosaic_0001>
module attributes {stable_mosaic.version = 11 : i64} {
  func.func @kernel(%arg0: i32, %arg1: i32, %arg2: memref<1x1x8x128xf32, #tpu.memory_space<vmem>>, %arg3: memref<2x1x8x128xf32, #tpu.memory_space<vmem>>, %arg4: memref<1x2x8x128xf32, #tpu.memory_space<vmem>>) attributes {dimension_semantics = [#tpu.dimension_semantics<parallel>, #tpu.dimension_semantics<arbitrary>], iteration_bounds = array<i64: 1, 1>, scalar_prefetch = 0 : i64, scratch_operands = 0 : i64, tpu.core_type = #tpu.core_type<tc>, window_params = [{transform_indices = @transform_0, window_bounds = array<i64: 1, 1, 8, 128>}, {transform_indices = @transform_1, window_bounds = array<i64: 2, 1, 8, 128>}, {transform_indices = @transform_2, window_bounds = array<i64: 1, 2, 8, 128>}]} {
    %c0_i32 = arith.constant 0 : i32
    %0 = arith.cmpi eq, %arg1, %c0_i32 : i32
    %1 = arith.extui %0 : i1 to i32
    %c0_i32_0 = arith.constant 0 : i32
    %2 = arith.cmpi ne, %1, %c0_i32_0 : i32
    scf.if %2 {
      %cst_17 = arith.constant 0.000000e+00 : f32
      %19 = vector.broadcast %cst_17 : f32 to vector<1x2x8x128xf32>
      %c0_18 = arith.constant 0 : index
      %c0_19 = arith.constant 0 : index
      %c0_20 = arith.constant 0 : index
      %c0_21 = arith.constant 0 : index
      %20 = vector.load %arg4[%c0_18, %c0_19, %c0_20, %c0_21] : memref<1x2x8x128xf32, #tpu.memory_space<vmem>>, vector<1x2x8x128xf32>
      tpu.vector_store %arg4[%c0_18, %c0_19, %c0_20, %c0_21], %19 {strides = array<i32>} : memref<1x2x8x128xf32, #tpu.memory_space<vmem>>, vector<1x2x8x128xf32>,
    } else {
    }
    %cst = arith.constant 0.000000e+00 : f32
    %3 = vector.broadcast %cst : f32 to vector<2x8x128xf32>
    %c0_i32_1 = arith.constant 0 : i32
    %c1_i32 = arith.constant 1 : i32
    %4 = arith.muli %c0_i32_1, %c1_i32 : i32
    %5 = tpu.assume_multiple %4, 1 : i32
    %c0 = arith.constant 0 : index
    %6 = arith.index_cast %5 : i32 to index
    %c0_2 = arith.constant 0 : index
    %c0_3 = arith.constant 0 : index
    %7 = vector.load %arg3[%c0, %6, %c0_2, %c0_3] : memref<2x1x8x128xf32, #tpu.memory_space<vmem>>, vector<2x1x8x128xf32>
    %c0_4 = arith.constant 0 : index
    %8 = arith.index_cast %5 : i32 to index
    %c0_5 = arith.constant 0 : index
    %c0_6 = arith.constant 0 : index
    %9 = vector.load %arg2[%c0_4, %8, %c0_5, %c0_6] : memref<1x1x8x128xf32, #tpu.memory_space<vmem>>, vector<1x1x8x128xf32>
    %10 = vector.broadcast %9 : vector<1x1x8x128xf32> to vector<2x1x8x128xf32>
    %11 = arith.mulf %10, %7 : vector<2x1x8x128xf32>
    %12 = arith.mulf %11, %7 : vector<2x1x8x128xf32>
    %cst_7 = arith.constant dense<0.000000e+00> : vector<2x8x128xf32>
    %13 = vector.multi_reduction <add>, %12, %cst_7 [1] : vector<2x1x8x128xf32> to vector<2x8x128xf32>
    %14 = arith.addf %3, %13 : vector<2x8x128xf32>
    %c1_i32_8 = arith.constant 1 : i32
    %c0_9 = arith.constant 0 : index
    %c0_10 = arith.constant 0 : index
    %c0_11 = arith.constant 0 : index
    %c0_12 = arith.constant 0 : index
    %15 = vector.load %arg4[%c0_9, %c0_10, %c0_11, %c0_12] : memref<1x2x8x128xf32, #tpu.memory_space<vmem>>, vector<1x2x8x128xf32>
    %16 = vector.shape_cast %14 : vector<2x8x128xf32> to vector<1x2x8x128xf32>
    %17 = arith.addf %15, %16 : vector<1x2x8x128xf32>
    %c0_13 = arith.constant 0 : index
    %c0_14 = arith.constant 0 : index
    %c0_15 = arith.constant 0 : index
    %c0_16 = arith.constant 0 : index
    %18 = vector.load %arg4[%c0_13, %c0_14, %c0_15, %c0_16] : memref<1x2x8x128xf32, #tpu.memory_space<vmem>>, vector<1x2x8x128xf32>
    tpu.vector_store %arg4[%c0_13, %c0_14, %c0_15, %c0_16], %17 {strides = array<i32>} : memref<1x2x8x128xf32, #tpu.memory_space<vmem>>, vector<1x2x8x128xf32>,
    return
  }
  func.func @transform_0(%arg0: i32, %arg1: i32) -> (i32, i32, i32, i32) {
    %c1_i32 = arith.constant 1 : i32
    %0 = arith.muli %arg0, %c1_i32 : i32
    %1 = arith.addi %0, %arg1 : i32
    %c0_i32 = arith.constant 0 : i32
    %c0_i32_0 = arith.constant 0 : i32
    %c0_i32_1 = arith.constant 0 : i32
    %c0_i32_2 = arith.constant 0 : i32
    return %c0_i32, %1, %c0_i32_0, %c0_i32_1 : i32, i32, i32, i32
  }
  func.func @transform_1(%arg0: i32, %arg1: i32) -> (i32, i32, i32, i32) {
    %c1_i32 = arith.constant 1 : i32
    %0 = arith.muli %arg0, %c1_i32 : i32
    %1 = arith.addi %0, %arg1 : i32
    %c0_i32 = arith.constant 0 : i32
    %c0_i32_0 = arith.constant 0 : i32
    %c0_i32_1 = arith.constant 0 : i32
    %c0_i32_2 = arith.constant 0 : i32
    return %c0_i32, %1, %c0_i32_0, %c0_i32_1 : i32, i32, i32, i32
  }
  func.func @transform_2(%arg0: i32, %arg1: i32) -> (i32, i32, i32, i32) {
    %c0_i32 = arith.constant 0 : i32
    %c0_i32_0 = arith.constant 0 : i32
    %c0_i32_1 = arith.constant 0 : i32
    %c0_i32_2 = arith.constant 0 : i32
    return %arg0, %c0_i32, %c0_i32_0, %c0_i32_1 : i32, i32, i32, i32
  }
}

</mosaic_0001>

<bundles_post_ra>
// kernel: tpu_custom_call.1
= control target key start
LH: loop header
LB: loop body
LE: loop exit
PB: predicated region body
PF: predicated region fallthrough
CT: control target
= control target key end

     0   :  { %7 = vsyncpa [#allocation3], 0  ;;  %s237_s0 = inlined_call_operand.hbm [shape: f32[1,1,8,128], index: 0, kind: input, shape index: {}]   ;;  %s238_s1 = inlined_call_operand.hbm [shape: f32[2,1,8,128], index: 1, kind: input, shape index: {}]   ;;  %s239_s2 = inlined_call_operand.hbm [shape: f32[1,2,8,128], index: 2, kind: output, shape index: {}]  }
   0x1   :  { %8 = vsyncpa [#allocation6], 0 }
   0x2   :  { %9 = vsyncpa [#allocation4], 0  ;;  %s168_s9 = smov [#allocation2]   ;;  %s169_s11 = smov [#allocation5]  }
   0x3   :  { %s19_s10 = sshll.u32 %s168_s9, 4  ;;  %s31_s12 = sshll.u32 %s169_s11, 4  ;;  %s20_s10 = int_to_ptr.vmem [resolvable:$true] %s19_s10  ;;  %s188_s12 = int_to_ptr.vmem [resolvable:$true] %s31_s12 }
   0x4   :  { %s96_s15 = scalar_lea.hbm %s237_s0, 128 }
   0x5   :  { %p97_p0 = scmp.ne.s32.totalorder %s237_s0, %s96_s15  ;;  %p100_p1 = scmp.lt.u32.totalorder %s96_s15, %s237_s0 }
   0x7   :  { %p102_p2 = pnand %p100_p1, %p97_p0 }
   0x9   :  { %105 = shalt.err (!%p102_p2)
}
   0xa   :  { %s106_s20 = scalar_lea.vmem %s20_s10, 128  ;;  %p111_p4 = scmp.lt.s32.totalorder %s20_s10, %s20_s10 }
   0xb   :  { %p107_p3 = scmp.ne.s32.totalorder %s20_s10, %s106_s20  ;;  %p112_p5 = scmp.lt.s32.totalorder %s106_s20, %s106_s20 }
   0xd   :  { %p113_p6 = por %p112_p5, %p111_p4 }
   0xf   :  { %p114_p7 = pnand %p113_p6, %p107_p3 }
  0x11   :  { %117 = shalt.err (!%p114_p7)
}
  0x12   :  { %22 = dma.hbm_to_vmem [thread:$0]  %s237_s0, 128, %s20_s10, [#allocation3]  }
  0x13   :  { %s118_s25 = scalar_lea.hbm %s238_s1, 256 }
  0x14   :  { %p119_p8 = scmp.ne.s32.totalorder %s238_s1, %s118_s25  ;;  %p122_p9 = scmp.lt.u32.totalorder %s118_s25, %s238_s1 }
  0x16   :  { %p124_p10 = pnand %p122_p9, %p119_p8 }
  0x18   :  { %127 = shalt.err (!%p124_p10)
}
  0x19   :  { %s128_s30 = scalar_lea.vmem %s188_s12, 256  ;;  %p133_p12 = scmp.lt.s32.totalorder %s188_s12, %s188_s12 }
  0x1a   :  { %p129_p11 = scmp.ne.s32.totalorder %s188_s12, %s128_s30  ;;  %p134_p13 = scmp.lt.s32.totalorder %s128_s30, %s128_s30 }
  0x1c   :  { %p135_p0 = por %p134_p13, %p133_p12 }
  0x1e   :  { %p136_p1 = pnand %p135_p0, %p129_p11 }
  0x20   :  { %139 = shalt.err (!%p136_p1)
}
  0x21   :  { %s170_s0 = smov 128   ;;  %s171_s3 = smov 8  }
  0x22   :  { %37 = dma.hbm_to_vmem [thread:$0]  %s238_s1, 256, %s188_s12, [#allocation6], %s170_s0, %s170_s0, %s171_s3  }
  0x23   :  { %162 = dma.done.wait [#allocation3], 128  }
  0x24   :  { %163 = vsyncadd [#allocation3], 4294967168 }
  0x25   :  { %164 = dma.done.wait [#allocation6], 256  }
  0x26   :  { %165 = vsyncadd [#allocation6], 4294967040  ;;  %v54_v0 = vld [vmem:[#allocation5] sm:$0xff]  ;;  %v57_v1 = vld [vmem:[#allocation2] sm:$0xff]  ;;  %s172_s6 = smov [#allocation7]  }
  0x27   :  { %v55_v2 = vld [vmem:[#allocation5 + $0x8] sm:$0xff]  ;;  %v58_v3 = vmul.f32 %v57_v1, %v54_v0  ;;  %s77_s7 = sshll.u32 %s172_s6, 4  ;;  %s78_s7 = int_to_ptr.vmem [resolvable:$true] %s77_s7 }
  0x28   :  { %v59_v4 = vmul.f32 %v57_v1, %v55_v2  ;;  %s140_s8 = scalar_lea.vmem %s78_s7, 256  ;;  %p145_p3 = scmp.lt.s32.totalorder %s78_s7, %s78_s7 }
  0x29   :  { %v60_v5 = vmul.f32 %v58_v3, %v54_v0  ;;  %p141_p2 = scmp.ne.s32.totalorder %s78_s7, %s140_s8  ;;  %p146_p4 = scmp.lt.s32.totalorder %s140_s8, %s140_s8 }
  0x2a   :  { %v61_v6 = vmul.f32 %v59_v4, %v55_v2 }
  0x2b   :  { %70 = vst [vmem:[#allocation7] sm:$0xff] %v60_v5  ;;  %p147_p5 = por %p146_p4, %p145_p3 }
  0x2c   :  { %71 = vst [vmem:[#allocation7 + $0x8] sm:$0xff] %v61_v6 }
  0x2d   :  { %p148_p6 = pnand %p147_p5, %p141_p2 }
  0x2f   :  { %151 = shalt.err (!%p148_p6)
}
  0x30   :  { %s152_s10 = scalar_lea.hbm %s239_s2, 256 }
  0x31   :  { %p153_p7 = scmp.ne.s32.totalorder %s239_s2, %s152_s10  ;;  %p156_p8 = scmp.lt.u32.totalorder %s152_s10, %s239_s2 }
  0x33   :  { %p158_p9 = pnand %p156_p8, %p153_p7 }
  0x35   :  { %161 = shalt.err (!%p158_p9)
}
  0x36   :  { %83 = dma.vmem_to_hbm [thread:$0]  %s78_s7, 256, %s239_s2, [#allocation4], %s170_s0, %s170_s0, %s171_s3  }
  0x37   :  { %166 = dma.done.wait [#allocation4], 256  }
  0x38   :  { %167 = vsyncadd [#allocation4], 4294967040 }
  0x39   :  { %87 = vsyncpa [#allocation3], 1 }
  0x3a   :  { %88 = vsyncpa [#allocation6], 1 }
  0x3b   :  { %89 = vsyncpa [#allocation4], 1 }

</bundles_post_ra>
